<compile_context>
chip_gen: v7x
topology: tpu7x:2x2x1
jax: 0.10.0
libtpu: 0.0.40
codegen_flags: <defaults>
</compile_context>

<pallas_src>
import functools

import jax
import jax.numpy as jnp
from jax import lax
from jax.experimental import pallas as pl
from jax.experimental.pallas import tpu as pltpu


# Canonical (M, K) @ (K, N) contraction.  Weights are pre-transposed in the
# wrapper, so the kernel never needs an in-kernel transpose.
_DN_CANON = (((1,), (0,)), ((), ()))


def _seq_kernel(has_bias, *refs):
    """Time-blocked GRU recurrence.

    refs: x (tb,B,I), h0 (B,H), w_ih_t (I,3H), w_hh_t (H,3H), [bias (2,3H)],
          out (tb,B,H), h_acc scratch (B,H) f32, gi scratch (tb,B,3H) f32.
    Bias rows: [b_ih, b_hh].
    """
    if has_bias:
        x_ref, h0_ref, wih_ref, whh_ref, b_ref, out_ref, h_acc, gi_ref = refs
    else:
        x_ref, h0_ref, wih_ref, whh_ref, out_ref, h_acc, gi_ref = refs
        b_ref = None

    f32 = jnp.float32
    tb, B, I = x_ref.shape
    H = h_acc.shape[-1]

    @pl.when(pl.program_id(0) == 0)
    def _():
        # Load the initial hidden state into the resident f32 accumulator.
        h_acc[...] = h0_ref[...].astype(f32)

    # ---- Hoisted input projection for the whole time block: ONE wide matmul ----
    # (tb*B, I) @ (I, 3H) -> (tb*B, 3H), f32 accumulation on the MXU.
    x_blk = x_ref[...].reshape(tb * B, I)
    gi = lax.dot_general(x_blk, wih_ref[...], _DN_CANON, preferred_element_type=f32)
    if b_ref is not None:
        gi = gi + b_ref[0:1, :]                 # b_ih, broadcast over rows
    gi_ref[...] = gi.reshape(tb, B, 3 * H)

    # ---- Recurrence: one fused (B,H)@(H,3H) matmul + gate math per step ----
    def step(s, h):                             # h: (B, H) f32 carried state
        gh = lax.dot_general(h.astype(whh_ref.dtype), whh_ref[...], _DN_CANON,
                             preferred_element_type=f32)
        if b_ref is not None:
            gh = gh + b_ref[1:2, :]             # b_hh
        gi_s = gi_ref[s]                        # (B, 3H) f32
        # Slices are lane-aligned when H % 128 == 0 (true at typical sizes).
        i_r, i_z, i_n = gi_s[:, :H], gi_s[:, H:2 * H], gi_s[:, 2 * H:]
        h_r, h_z, h_n = gh[:, :H], gh[:, H:2 * H], gh[:, 2 * H:]
        r = jax.nn.sigmoid(i_r + h_r)
        z = jax.nn.sigmoid(i_z + h_z)
        n = jnp.tanh(i_n + r * h_n)
        hy = n + z * (h - n)
        out_ref[s] = hy.astype(out_ref.dtype)
        return hy

    # Short fixed trip-count -> unroll for scheduler visibility.
    h_final = lax.fori_loop(0, tb, step, h_acc[...], unroll=True)
    h_acc[...] = h_final                        # keep full precision across blocks


# ------------------------------- wrappers -----------------------------------

def _pack_bias(b_ih, b_hh, hidden_size):
    """Returns (2, 3H) f32 with rows [b_ih, b_hh] (zeros when missing), or None."""
    if b_ih is None and b_hh is None:
        return None
    three_h = 3 * hidden_size
    f32 = jnp.float32
    bi = jnp.zeros((three_h,), f32) if b_ih is None else b_ih.astype(f32)
    bh = jnp.zeros((three_h,), f32) if b_hh is None else b_hh.astype(f32)
    return jnp.stack([bi, bh], axis=0)


def _nbytes(shape, dtype):
    n = 1
    for d in shape:
        n *= int(d)
    return n * jnp.dtype(dtype).itemsize


def _vmem_cap_bytes():
    # 128 MiB on v5e/v6e, 64 MiB per TensorCore on v7x.  Query when available,
    # otherwise assume the smallest (v7x) so the limit is always physical.
    try:
        cap = int(pltpu.get_tpu_info().vmem_capacity_bytes)
        if cap > 0:
            return cap
    except Exception:
        pass
    return 64 << 20


def _pick_time_block(seq_len, target):
    tb = max(1, min(int(seq_len), int(target)))
    while seq_len % tb:
        tb -= 1
    return tb


def fd_gru_sequence(inputs, hidden, d_input, d_hidden, w_ih, w_hh,
                    b_ih=None, b_hh=None, time_block=8):
    """Run the FDGRU cell over a whole sequence inside ONE pallas_call.

    inputs: (T, B, I), hidden: (B, H), w_ih: (3H, I), w_hh: (3H, H) (PyTorch
    layout), b_ih/b_hh: (3H,) or None.  Returns all hidden states (T, B, H).
    d_input/d_hidden are backward-only feedback matrices (ignored in forward).
    """
    del d_input, d_hidden  # backward-only (see TODO at top of file)

    T, B, I = inputs.shape
    H = hidden.shape[-1]
    three_h = 3 * H

    # One-time wrapper-side transpose to (K, 3H): amortized over the whole
    # sequence; the kernel then runs canonical (M,K)@(K,N) matmuls.
    wih_t = jnp.swapaxes(w_ih, 0, 1)   # (I, 3H)
    whh_t = jnp.swapaxes(w_hh, 0, 1)   # (H, 3H)
    bias = _pack_bias(b_ih, b_hh, H)
    has_bias = bias is not None
    out_dtype = hidden.dtype

    tb = _pick_time_block(T, time_block)
    nblk = T // tb

    in_specs = [
        pl.BlockSpec((tb, B, I), lambda t: (t, 0, 0)),   # streamed input slab
        pl.BlockSpec((B, H), lambda t: (0, 0)),          # h0 (used at t == 0 only)
        pl.BlockSpec((I, three_h), lambda t: (0, 0)),    # weights: constant index
        pl.BlockSpec((H, three_h), lambda t: (0, 0)),    #   -> DMA'd from HBM once
    ]
    args = [inputs, hidden, wih_t, whh_t]
    if has_bias:
        in_specs.append(pl.BlockSpec((2, three_h), lambda t: (0, 0)))
        args.append(bias)

    scratch_shapes = [
        pltpu.VMEM((B, H), jnp.float32),            # carried hidden state (f32)
        pltpu.VMEM((tb, B, three_h), jnp.float32),  # hoisted input projections
    ]

    # VMEM budget: streamed blocks double-buffer; constant-index blocks are
    # conservatively counted twice as well (see single-buffering TODO above).
    stream_bytes = _nbytes((tb, B, I), inputs.dtype) + _nbytes((tb, B, H), out_dtype)
    resident_bytes = (_nbytes((I, three_h), wih_t.dtype)
                      + _nbytes((H, three_h), whh_t.dtype)
                      + _nbytes((B, H), hidden.dtype)
                      + (_nbytes((2, three_h), jnp.float32) if has_bias else 0))
    scratch_bytes = (_nbytes((B, H), jnp.float32)
                     + _nbytes((tb, B, three_h), jnp.float32))
    request = 2 * (stream_bytes + resident_bytes) + scratch_bytes + (4 << 20)
    vmem_limit = int(min(max(request, 8 << 20), int(0.75 * _vmem_cap_bytes())))

    return pl.pallas_call(
        functools.partial(_seq_kernel, has_bias),
        out_shape=jax.ShapeDtypeStruct((T, B, H), out_dtype),
        grid_spec=pltpu.PrefetchScalarGridSpec(
            num_scalar_prefetch=0,
            grid=(nblk,),
            in_specs=in_specs,
            out_specs=pl.BlockSpec((tb, B, H), lambda t: (t, 0, 0)),
            scratch_shapes=scratch_shapes,
        ),
        compiler_params=pltpu.CompilerParams(
            # Time is a true recurrence -> 'arbitrary'.
            dimension_semantics=("arbitrary",),
            vmem_limit_bytes=vmem_limit,
        ),
    )(*args)


def fd_gru_cell(input, hidden, d_input, d_hidden, w_ih, w_hh, b_ih=None, b_hh=None):
    """Forward of FDGRUCell (single timestep), matching the PyTorch module.

    Routed through the time-blocked sequence kernel with T = 1 so both paths
    share the fused 3H-wide-matmul kernel.  For multi-step rollouts call
    fd_gru_sequence directly so the weight DMA is amortized over T steps.
    """
    hs = fd_gru_sequence(input[None], hidden, d_input, d_hidden, w_ih, w_hh,
                         b_ih, b_hh, time_block=1)
    return hs[0]


# ----------------------------- pure-JAX references -----------------------------

def _reference_cell(x, h, w_ih, w_hh, b_ih, b_hh):
    f32 = jnp.float32
    x = x.astype(f32)
    h = h.astype(f32)
    gi = x @ w_ih.astype(f32).T
    gh = h @ w_hh.astype(f32).T
    if b_ih is not None:
        gi = gi + b_ih.astype(f32)
    if b_hh is not None:
        gh = gh + b_hh.astype(f32)
    H = h.shape[-1]
    i_r, i_z, i_n = gi[:, :H], gi[:, H:2 * H], gi[:, 2 * H:]
    h_r, h_z, h_n = gh[:, :H], gh[:, H:2 * H], gh[:, 2 * H:]
    r = jax.nn.sigmoid(i_r + h_r)
    z = jax.nn.sigmoid(i_z + h_z)
    n = jnp.tanh(i_n + r * h_n)
    return n + z * (h - n)


def _reference_sequence(xs, h0, w_ih, w_hh, b_ih, b_hh):
    def step(h, x):
        hy = _reference_cell(x, h, w_ih, w_hh, b_ih, b_hh)
        return hy, hy
    _, hs = jax.lax.scan(step, h0.astype(jnp.float32), xs.astype(jnp.float32))
    return hs


if __name__ == "__main__":
    key = jax.random.PRNGKey(0)
    B, I, H, T = 8, 128, 128, 16
    ks = jax.random.split(key, 9)

    x = jax.random.normal(ks[0], (B, I), jnp.float32)
    h = jax.random.normal(ks[1], (B, H), jnp.float32)
    w_ih = jax.random.normal(ks[2], (3 * H, I), jnp.float32) * 0.05
    w_hh = jax.random.normal(ks[3], (3 * H, H), jnp.float32) * 0.05
    b_ih = jax.random.normal(ks[4], (3 * H,), jnp.float32) * 0.05
    b_hh = jax.random.normal(ks[5], (3 * H,), jnp.float32) * 0.05
    # Fixed feedback matrices: only used by the (untranslated) custom backward.
    d_input = jax.random.normal(ks[6], (3 * H, I), jnp.float32)
    d_hidden = jax.random.normal(ks[7], (3 * H, H), jnp.float32)
    xs = jax.random.normal(ks[8], (T, B, I), jnp.float32)

    # --- single-step cell (module forward), f32, with bias ---
    hy = jax.block_until_ready(
        fd_gru_cell(x, h, d_input, d_hidden, w_ih, w_hh, b_ih, b_hh))
    ref = _reference_cell(x, h, w_ih, w_hh, b_ih, b_hh)
    assert hy.shape == (B, H)
    assert jnp.allclose(hy, ref, atol=2e-4, rtol=2e-4), "cell f32 mismatch"

    # --- bias-free variant (separate kernel specialization, no zero-bias DMA) ---
    hy_nb = jax.block_until_ready(fd_gru_cell(x, h, d_input, d_hidden, w_ih, w_hh))
    ref_nb = _reference_cell(x, h, w_ih, w_hh, None, None)
    assert jnp.allclose(hy_nb, ref_nb, atol=2e-4, rtol=2e-4), "cell no-bias mismatch"

    # --- time-blocked sequence (grid = T/tb, weights DMA'd once), f32 ---
    hs = jax.block_until_ready(
        fd_gru_sequence(xs, h, d_input, d_hidden, w_ih, w_hh, b_ih, b_hh,
                        time_block=8))
    ref_seq = _reference_sequence(xs, h, w_ih, w_hh, b_ih, b_hh)
    assert hs.shape == (T, B, H)
    assert jnp.allclose(hs, ref_seq, atol=1e-3, rtol=1e-3), "sequence f32 mismatch"

    # --- time-blocked sequence with bf16 weights/activations (f32 accumulate) ---
    bf = jnp.bfloat16
    hs_bf = jax.block_until_ready(
        fd_gru_sequence(xs.astype(bf), h.astype(bf), d_input, d_hidden,
                        w_ih.astype(bf), w_hh.astype(bf), b_ih, b_hh,
                        time_block=8))
    ref_bf = _reference_sequence(xs.astype(bf).astype(jnp.float32),
                                 h.astype(bf).astype(jnp.float32),
                                 w_ih.astype(bf).astype(jnp.float32),
                                 w_hh.astype(bf).astype(jnp.float32),
                                 b_ih, b_hh)
    assert jnp.allclose(hs_bf.astype(jnp.float32), ref_bf, atol=1e-1, rtol=1e-1), \
        "sequence bf16 mismatch"

    print("KERNEL_OK")
</pallas_src>

<mosaic_0001>
module attributes {stable_mosaic.version = 11 : i64} {
  func.func @_seq_kernel(%arg0: i32, %arg1: memref<1x8x128xf32, #tpu.memory_space<vmem>>, %arg2: memref<8x128xf32, #tpu.memory_space<vmem>>, %arg3: memref<128x384xf32, #tpu.memory_space<vmem>>, %arg4: memref<128x384xf32, #tpu.memory_space<vmem>>, %arg5: memref<2x384xf32, #tpu.memory_space<vmem>>, %arg6: memref<1x8x128xf32, #tpu.memory_space<vmem>>, %arg7: memref<8x128xf32, #tpu.memory_space<vmem>>, %arg8: memref<1x8x384xf32, #tpu.memory_space<vmem>>) attributes {dimension_semantics = [#tpu.dimension_semantics<arbitrary>], iteration_bounds = array<i64: 1>, scalar_prefetch = 0 : i64, scratch_operands = 2 : i64, tpu.core_type = #tpu.core_type<tc>, window_params = [{transform_indices = @transform_0, window_bounds = array<i64: 1, 8, 128>}, {pipeline_mode = #tpu.pipeline_mode<synchronous>, transform_indices = @transform_1, window_bounds = array<i64: 8, 128>}, {pipeline_mode = #tpu.pipeline_mode<synchronous>, transform_indices = @transform_2, window_bounds = array<i64: 128, 384>}, {pipeline_mode = #tpu.pipeline_mode<synchronous>, transform_indices = @transform_3, window_bounds = array<i64: 128, 384>}, {pipeline_mode = #tpu.pipeline_mode<synchronous>, transform_indices = @transform_4, window_bounds = array<i64: 2, 384>}, {transform_indices = @transform_5, window_bounds = array<i64: 1, 8, 128>}]} {
    %c0_i32 = arith.constant 0 : i32
    %0 = arith.cmpi eq, %arg0, %c0_i32 : i32
    %1 = arith.extui %0 : i1 to i32
    %c0_i32_0 = arith.constant 0 : i32
    %2 = arith.cmpi ne, %1, %c0_i32_0 : i32
    scf.if %2 {
      %c0_25 = arith.constant 0 : index
      %c0_26 = arith.constant 0 : index
      %50 = vector.load %arg2[%c0_25, %c0_26] : memref<8x128xf32, #tpu.memory_space<vmem>>, vector<8x128xf32>
      %c0_27 = arith.constant 0 : index
      %c0_28 = arith.constant 0 : index
      %51 = vector.load %arg7[%c0_27, %c0_28] : memref<8x128xf32, #tpu.memory_space<vmem>>, vector<8x128xf32>
      tpu.vector_store %arg7[%c0_27, %c0_28], %50 {strides = array<i32>} : memref<8x128xf32, #tpu.memory_space<vmem>>, vector<8x128xf32>,
    } else {
    }
    %c0 = arith.constant 0 : index
    %c0_1 = arith.constant 0 : index
    %c0_2 = arith.constant 0 : index
    %3 = vector.load %arg1[%c0, %c0_1, %c0_2] : memref<1x8x128xf32, #tpu.memory_space<vmem>>, vector<1x8x128xf32>
    %4 = vector.shape_cast %3 : vector<1x8x128xf32> to vector<8x128xf32>
    %c0_3 = arith.constant 0 : index
    %c0_4 = arith.constant 0 : index
    %5 = vector.load %arg3[%c0_3, %c0_4] : memref<128x384xf32, #tpu.memory_space<vmem>>, vector<128x384xf32>
    %cst = arith.constant dense<0.000000e+00> : vector<8x384xf32>
    %6 = tpu.matmul %4, %5, %cst {dimension_numbers = #tpu.dot_dimension_numbers<[1], [0], [0], [1], [0, 0, 1, 1], [], []>} : vector<8x128xf32>, vector<128x384xf32>, vector<8x384xf32> -> vector<8x384xf32>
    %c0_5 = arith.constant 0 : index
    %c0_6 = arith.constant 0 : index
    %7 = vector.load %arg5[%c0_5, %c0_6] : memref<2x384xf32, #tpu.memory_space<vmem>>, vector<1x384xf32>
    %8 = vector.broadcast %7 : vector<1x384xf32> to vector<8x384xf32>
    %9 = arith.addf %6, %8 : vector<8x384xf32>
    %10 = vector.shape_cast %9 : vector<8x384xf32> to vector<1x8x384xf32>
    %c0_7 = arith.constant 0 : index
    %c0_8 = arith.constant 0 : index
    %c0_9 = arith.constant 0 : index
    %11 = vector.load %arg8[%c0_7, %c0_8, %c0_9] : memref<1x8x384xf32, #tpu.memory_space<vmem>>, vector<1x8x384xf32>
    tpu.vector_store %arg8[%c0_7, %c0_8, %c0_9], %10 {strides = array<i32>} : memref<1x8x384xf32, #tpu.memory_space<vmem>>, vector<1x8x384xf32>,
    %c0_10 = arith.constant 0 : index
    %c0_11 = arith.constant 0 : index
    %12 = vector.load %arg7[%c0_10, %c0_11] : memref<8x128xf32, #tpu.memory_space<vmem>>, vector<8x128xf32>
    %c0_i32_12 = arith.constant 0 : i32
    %c0_13 = arith.constant 0 : index
    %c0_14 = arith.constant 0 : index
    %13 = vector.load %arg4[%c0_13, %c0_14] : memref<128x384xf32, #tpu.memory_space<vmem>>, vector<128x384xf32>
    %cst_15 = arith.constant dense<0.000000e+00> : vector<8x384xf32>
    %14 = tpu.matmul %12, %13, %cst_15 {dimension_numbers = #tpu.dot_dimension_numbers<[1], [0], [0], [1], [0, 0, 1, 1], [], []>} : vector<8x128xf32>, vector<128x384xf32>, vector<8x384xf32> -> vector<8x384xf32>
    %c1 = arith.constant 1 : index
    %c0_16 = arith.constant 0 : index
    %15 = vector.load %arg5[%c1, %c0_16] : memref<2x384xf32, #tpu.memory_space<vmem>>, vector<1x384xf32>
    %16 = vector.broadcast %15 : vector<1x384xf32> to vector<8x384xf32>
    %17 = arith.addf %14, %16 : vector<8x384xf32>
    %18 = arith.index_cast %c0_i32_12 : i32 to index
    %c0_17 = arith.constant 0 : index
    %c0_18 = arith.constant 0 : index
    %19 = vector.load %arg8[%18, %c0_17, %c0_18] : memref<1x8x384xf32, #tpu.memory_space<vmem>>, vector<1x8x384xf32>
    %20 = vector.shape_cast %19 : vector<1x8x384xf32> to vector<8x384xf32>
    %21 = vector.extract_strided_slice %20 {offsets = [0, 0], sizes = [8, 128], strides = [1, 1]} : vector<8x384xf32> to vector<8x128xf32>
    %22 = vector.extract_strided_slice %20 {offsets = [0, 128], sizes = [8, 128], strides = [1, 1]} : vector<8x384xf32> to vector<8x128xf32>
    %23 = vector.extract_strided_slice %20 {offsets = [0, 256], sizes = [8, 128], strides = [1, 1]} : vector<8x384xf32> to vector<8x128xf32>
    %24 = vector.extract_strided_slice %17 {offsets = [0, 0], sizes = [8, 128], strides = [1, 1]} : vector<8x384xf32> to vector<8x128xf32>
    %25 = vector.extract_strided_slice %17 {offsets = [0, 128], sizes = [8, 128], strides = [1, 1]} : vector<8x384xf32> to vector<8x128xf32>
    %26 = vector.extract_strided_slice %17 {offsets = [0, 256], sizes = [8, 128], strides = [1, 1]} : vector<8x384xf32> to vector<8x128xf32>
    %27 = arith.addf %21, %24 : vector<8x128xf32>
    %28 = arith.negf %27 : vector<8x128xf32>
    %29 = math.exp %28 : vector<8x128xf32>
    %cst_19 = arith.constant 1.000000e+00 : f32
    %30 = vector.broadcast %cst_19 : f32 to vector<8x128xf32>
    %31 = arith.addf %30, %29 : vector<8x128xf32>
    %32 = arith.divf %30, %31 : vector<8x128xf32>
    %33 = arith.addf %22, %25 : vector<8x128xf32>
    %34 = arith.negf %33 : vector<8x128xf32>
    %35 = math.exp %34 : vector<8x128xf32>
    %cst_20 = arith.constant 1.000000e+00 : f32
    %36 = vector.broadcast %cst_20 : f32 to vector<8x128xf32>
    %37 = arith.addf %36, %35 : vector<8x128xf32>
    %38 = arith.divf %36, %37 : vector<8x128xf32>
    %39 = arith.mulf %32, %26 : vector<8x128xf32>
    %40 = arith.addf %23, %39 : vector<8x128xf32>
    %41 = math.tanh %40 : vector<8x128xf32>
    %42 = arith.subf %12, %41 : vector<8x128xf32>
    %43 = arith.mulf %38, %42 : vector<8x128xf32>
    %44 = arith.addf %41, %43 : vector<8x128xf32>
    %45 = arith.index_cast %c0_i32_12 : i32 to index
    %c0_21 = arith.constant 0 : index
    %c0_22 = arith.constant 0 : index
    %46 = vector.load %arg6[%45, %c0_21, %c0_22] : memref<1x8x128xf32, #tpu.memory_space<vmem>>, vector<1x8x128xf32>
    %47 = vector.shape_cast %46 : vector<1x8x128xf32> to vector<8x128xf32>
    %48 = vector.shape_cast %44 : vector<8x128xf32> to vector<1x8x128xf32>
    tpu.vector_store %arg6[%45, %c0_21, %c0_22], %48 {strides = array<i32>} : memref<1x8x128xf32, #tpu.memory_space<vmem>>, vector<1x8x128xf32>,
    %c1_i32 = arith.constant 1 : i32
    %c0_23 = arith.constant 0 : index
    %c0_24 = arith.constant 0 : index
    %49 = vector.load %arg7[%c0_23, %c0_24] : memref<8x128xf32, #tpu.memory_space<vmem>>, vector<8x128xf32>
    tpu.vector_store %arg7[%c0_23, %c0_24], %44 {strides = array<i32>} : memref<8x128xf32, #tpu.memory_space<vmem>>, vector<8x128xf32>,
    return
  }
  func.func @transform_0(%arg0: i32) -> (i32, i32, i32) {
    %c0_i32 = arith.constant 0 : i32
    %c0_i32_0 = arith.constant 0 : i32
    %c0_i32_1 = arith.constant 0 : i32
    return %arg0, %c0_i32, %c0_i32_0 : i32, i32, i32
  }
  func.func @transform_1(%arg0: i32) -> (i32, i32) {
    %c0_i32 = arith.constant 0 : i32
    %c0_i32_0 = arith.constant 0 : i32
    %c0_i32_1 = arith.constant 0 : i32
    return %c0_i32, %c0_i32_0 : i32, i32
  }
  func.func @transform_2(%arg0: i32) -> (i32, i32) {
    %c0_i32 = arith.constant 0 : i32
    %c0_i32_0 = arith.constant 0 : i32
    %c0_i32_1 = arith.constant 0 : i32
    return %c0_i32, %c0_i32_0 : i32, i32
  }
  func.func @transform_3(%arg0: i32) -> (i32, i32) {
    %c0_i32 = arith.constant 0 : i32
    %c0_i32_0 = arith.constant 0 : i32
    %c0_i32_1 = arith.constant 0 : i32
    return %c0_i32, %c0_i32_0 : i32, i32
  }
  func.func @transform_4(%arg0: i32) -> (i32, i32) {
    %c0_i32 = arith.constant 0 : i32
    %c0_i32_0 = arith.constant 0 : i32
    %c0_i32_1 = arith.constant 0 : i32
    return %c0_i32, %c0_i32_0 : i32, i32
  }
  func.func @transform_5(%arg0: i32) -> (i32, i32, i32) {
    %c0_i32 = arith.constant 0 : i32
    %c0_i32_0 = arith.constant 0 : i32
    %c0_i32_1 = arith.constant 0 : i32
    return %arg0, %c0_i32, %c0_i32_0 : i32, i32, i32
  }
}

</mosaic_0001>

<bundles_post_ra>
// kernel: tpu_custom_call.1
= control target key start
LH: loop header
LB: loop body
LE: loop exit
PB: predicated region body
PF: predicated region fallthrough
CT: control target
= control target key end

     0   :  { %10 = vsyncpa [#allocation5], 0  ;;  %s1029_s0 = inlined_call_operand.hbm [shape: f32[1,8,128], index: 0, kind: input, shape index: {}]   ;;  %s1030_s1 = inlined_call_operand.hbm [shape: f32[8,128], index: 1, kind: input, shape index: {}]   ;;  %s1031_s2 = inlined_call_operand.hbm [shape: f32[128,384], index: 2, kind: input, shape index: {}]   ;;  %s1032_s3 = inlined_call_operand.hbm [shape: f32[128,384], index: 3, kind: input, shape index: {}]   ;;  %s1033_s4 = inlined_call_operand.vmem [shape: f32[2,384], index: 4, kind: input, shape index: {}]   ;;  %s1034_s5 = inlined_call_operand.hbm [shape: f32[1,8,128], index: 5, kind: output, shape index: {}]  }
   0x1   :  { %11 = vsyncpa [#allocation8], 0 }
   0x2   :  { %12 = vsyncpa [#allocation11], 0 }
   0x3   :  { %13 = vsyncpa [#allocation6], 0  ;;  %s901_s18 = smov [#allocation7]   ;;  %s902_s20 = smov [#allocation4]  }
   0x4   :  { %s30_s19 = sshll.u32 %s901_s18, 4  ;;  %s20_s21 = sshll.u32 %s902_s20, 4  ;;  %s31_s19 = int_to_ptr.vmem [resolvable:$true] %s30_s19  ;;  %s21_s21 = int_to_ptr.vmem [resolvable:$true] %s20_s21 }
   0x5   :  { %s783_s24 = scalar_lea.hbm %s1030_s1, 128 }
   0x6   :  { %p784_p0 = scmp.ne.s32.totalorder %s1030_s1, %s783_s24  ;;  %p787_p1 = scmp.lt.u32.totalorder %s783_s24, %s1030_s1 }
   0x8   :  { %p789_p2 = pnand %p787_p1, %p784_p0 }
   0xa   :  { %792 = shalt.err (!%p789_p2)
}
   0xb   :  { %s793_s29 = scalar_lea.vmem %s31_s19, 128  ;;  %p798_p4 = scmp.lt.s32.totalorder %s31_s19, %s31_s19 }
   0xc   :  { %p794_p3 = scmp.ne.s32.totalorder %s31_s19, %s793_s29  ;;  %p799_p5 = scmp.lt.s32.totalorder %s793_s29, %s793_s29 }
   0xe   :  { %p800_p6 = por %p799_p5, %p798_p4 }
  0x10   :  { %p801_p7 = pnand %p800_p6, %p794_p3 }
  0x12   :  { %804 = shalt.err (!%p801_p7)
}
  0x13   :  { %33 = dma.hbm_to_vmem [thread:$0]  %s1030_s1, 128, %s31_s19, [#allocation8]  }
  0x14   :  { %s805_s9 = scalar_lea.hbm %s1029_s0, 128 }
  0x15   :  { %p806_p8 = scmp.ne.s32.totalorder %s1029_s0, %s805_s9  ;;  %p809_p9 = scmp.lt.u32.totalorder %s805_s9, %s1029_s0 }
  0x17   :  { %p811_p10 = pnand %p809_p9, %p806_p8 }
  0x19   :  { %814 = shalt.err (!%p811_p10)
}
  0x1a   :  { %s815_s14 = scalar_lea.vmem %s21_s21, 128  ;;  %p820_p12 = scmp.lt.s32.totalorder %s21_s21, %s21_s21 }
  0x1b   :  { %p816_p11 = scmp.ne.s32.totalorder %s21_s21, %s815_s14  ;;  %p821_p13 = scmp.lt.s32.totalorder %s815_s14, %s815_s14 }
  0x1d   :  { %p822_p0 = por %p821_p13, %p820_p12 }
  0x1f   :  { %p823_p1 = pnand %p822_p0, %p816_p11 }
  0x21   :  { %826 = shalt.err (!%p823_p1)
}
  0x22   :  { %23 = dma.hbm_to_vmem [thread:$0]  %s1029_s0, 128, %s21_s21, [#allocation5]  }
  0x23   :  { %s903_s16 = smov [#allocation9]   ;;  %s827_s20 = scalar_lea.hbm %s1031_s2, 6144 }
  0x24   :  { %s39_s17 = sshll.u32 %s903_s16, 4  ;;  %p828_p2 = scmp.ne.s32.totalorder %s1031_s2, %s827_s20  ;;  %s40_s17 = int_to_ptr.vmem [resolvable:$true] %s39_s17 }
  0x25   :  { %p831_p3 = scmp.lt.u32.totalorder %s827_s20, %s1031_s2 }
  0x27   :  { %p833_p4 = pnand %p831_p3, %p828_p2 }
  0x29   :  { %836 = shalt.err (!%p833_p4)
}
  0x2a   :  { %s837_s26 = scalar_lea.vmem %s40_s17, 6144  ;;  %p842_p6 = scmp.lt.s32.totalorder %s40_s17, %s40_s17 }
  0x2b   :  { %p838_p5 = scmp.ne.s32.totalorder %s40_s17, %s837_s26  ;;  %p843_p7 = scmp.lt.s32.totalorder %s837_s26, %s837_s26 }
  0x2d   :  { %p844_p8 = por %p843_p7, %p842_p6 }
  0x2f   :  { %p845_p9 = pnand %p844_p8, %p838_p5 }
  0x31   :  { %848 = shalt.err (!%p845_p9)
}
  0x32   :  { %s904_s0 = smov 384   ;;  %s905_s21 = smov 24  }
  0x33   :  { %45 = dma.hbm_to_vmem [thread:$0]  %s1031_s2, 6144, %s40_s17, [#allocation8], %s904_s0, %s904_s0, %s905_s21  }
  0x34   :  { %s906_s29 = smov [#allocation10]   ;;  %s849_s8 = scalar_lea.hbm %s1032_s3, 6144 }
  0x35   :  { %s51_s30 = sshll.u32 %s906_s29, 4  ;;  %p850_p10 = scmp.ne.s32.totalorder %s1032_s3, %s849_s8  ;;  %s52_s30 = int_to_ptr.vmem [resolvable:$true] %s51_s30 }
  0x36   :  { %p853_p11 = scmp.lt.u32.totalorder %s849_s8, %s1032_s3 }
  0x38   :  { %p855_p12 = pnand %p853_p11, %p850_p10 }
  0x3a   :  { %858 = shalt.err (!%p855_p12)
}
  0x3b   :  { %s859_s13 = scalar_lea.vmem %s52_s30, 6144  ;;  %p864_p0 = scmp.lt.s32.totalorder %s52_s30, %s52_s30 }
  0x3c   :  { %p860_p13 = scmp.ne.s32.totalorder %s52_s30, %s859_s13  ;;  %p865_p1 = scmp.lt.s32.totalorder %s859_s13, %s859_s13 }
  0x3e   :  { %p866_p2 = por %p865_p1, %p864_p0 }
  0x40   :  { %p867_p3 = pnand %p866_p2, %p860_p13 }
  0x42   :  { %870 = shalt.err (!%p867_p3)
}
  0x43   :  { %57 = dma.hbm_to_vmem [thread:$0]  %s1032_s3, 6144, %s52_s30, [#allocation11], %s904_s0, %s904_s0, %s905_s21  }
  0x44   :  { %893 = dma.done.wait [#allocation5], 128  }
  0x45   :  { %894 = vsyncadd [#allocation5], 4294967168 }
  0x46   :  { %895 = dma.done.wait [#allocation8], 6272  }
  0x47   :  { %896 = vsyncadd [#allocation8], 4294961024 }
  0x48   :  { %897 = dma.done.wait [#allocation11], 6144  }
  0x49   :  { %898 = vsyncadd [#allocation11], 4294961152  ;;  %v907_v0 = vmov 0.0|0.0   ;;  %v908_v1 = vmov 0.0   ;;  %vm909_vm0 = vmmov 0   ;;  %v80_v2 = vld [vmem:[#allocation9 + $0x8] sm:$0xff] }
  0x4a   :  { %677 = vmatprep.subr.bf16.mxu1 %v907_v0  ;;  %208 = vmatprep.mubr.f32.mxu0 %v908_v1  ;;  %v83_v3 = vld [vmem:[#allocation9 + $0x20] sm:$0xff]  ;;  %v82_v6 = vld [vmem:[#allocation9 + $0x18] sm:$0xff]  ;;  %v89_v8 = vld [vmem:[#allocation9 + $0x50] sm:$0xff] }
  0x4b   :  { %607 = vmatprep.mubr.msk.f32.mxu1 %vm909_vm0, %v908_v1  ;;  %v79_v4 = vld [vmem:[#allocation9] sm:$0xff]  ;;  %v645_v5 = vpack.c.bf16 %v83_v3, %v80_v2  ;;  %v86_v7 = vld [vmem:[#allocation9 + $0x38] sm:$0xff]  ;;  %v85_v11 = vld [vmem:[#allocation9 + $0x30] sm:$0xff] }
  0x4c   :  { %v647_v9 = vpack.c.bf16 %v82_v6, %v79_v4  ;;  %v649_v10 = vpack.c.bf16 %v89_v8, %v86_v7  ;;  %v88_v12 = vld [vmem:[#allocation9 + $0x48] sm:$0xff]  ;;  %v95_v14 = vld [vmem:[#allocation9 + $0x80] sm:$0xff]  ;;  %v94_v18 = vld [vmem:[#allocation9 + $0x78] sm:$0xff] }
  0x4d   :  { %v92_v13 = vld [vmem:[#allocation9 + $0x68] sm:$0xff]  ;;  %646 = vmatprep.subr.bf16.mxu0 %v645_v5  ;;  %v651_v15 = vpack.c.bf16 %v88_v12, %v85_v11  ;;  %v91_v17 = vld [vmem:[#allocation9 + $0x60] sm:$0xff]  ;;  %v98_v19 = vld [vmem:[#allocation9 + $0x98] sm:$0xff] }
  0x4e   :  { %648 = vmatpush1.bf16.msra.mxu0 %v647_v9  ;;  %v653_v16 = vpack.c.bf16 %v95_v14, %v92_v13  ;;  %v101_v20 = vld [vmem:[#allocation9 + $0xb0] sm:$0xff]  ;;  %v655_v21 = vpack.c.bf16 %v94_v18, %v91_v17  ;;  %v100_v24 = vld [vmem:[#allocation9 + $0xa8] sm:$0xff]  ;;  %v107_v28 = vld [vmem:[#allocation9 + $0xe0] sm:$0xff] }
  0x4f   :  { %650 = vmatprep.subr.bf16.mxu0 %v649_v10  ;;  %v97_v22 = vld [vmem:[#allocation9 + $0x90] sm:$0xff]  ;;  %v657_v23 = vpack.c.bf16 %v101_v20, %v98_v19  ;;  %v84_v26 = vld [vmem:[#allocation9 + $0x28] sm:$0xff]  ;;  %v87_v30 = vld [vmem:[#allocation9 + $0x40] sm:$0xff] }
  0x50   :  { %v81_v25 = vld [vmem:[#allocation9 + $0x10] sm:$0xff]  ;;  %v104_v27 = vld [vmem:[#allocation9 + $0xc8] sm:$0xff]  ;;  %v90_v31 = vld [vmem:[#allocation9 + $0x58] sm:$0xff]  ;;  %v659_v32 = vpack.c.bf16 %v100_v24, %v97_v22 }
  0x51   :  { %v678_v29 = vpack.c.bf16 %v84_v26, %v81_v25  ;;  %v681_v33 = vpack.c.bf16 %v90_v31, %v87_v30  ;;  %v661_v34 = vpack.c.bf16 %v107_v28, %v104_v27  ;;  %v103_v35 = vld [vmem:[#allocation9 + $0xc0] sm:$0xff]  ;;  %v106_v36 = vld [vmem:[#allocation9 + $0xd8] sm:$0xff]  ;;  %v93_v37 = vld [vmem:[#allocation9 + $0x70] sm:$0xff] }
  0x52   :  { %652 = vmatpush1.bf16.msra.mxu0 %v651_v15  ;;  %v110_v38 = vld [vmem:[#allocation9 + $0xf8] sm:$0xff]  ;;  %v113_v39 = vld [vmem:[#allocation9 + $0x110] sm:$0xff]  ;;  %v96_v40 = vld [vmem:[#allocation9 + $0x88] sm:$0xff]  ;;  %v663_v41 = vpack.c.bf16 %v106_v36, %v103_v35 }
  0x53   :  { %654 = vmatprep.subr.bf16.mxu0 %v653_v16  ;;  %679 = vmatpush3.bf16.msra.mxu1 %v678_v29  ;;  %v109_v42 = vld [vmem:[#allocation9 + $0xf0] sm:$0xff]  ;;  %v684_v43 = vpack.c.bf16 %v96_v40, %v93_v37  ;;  %v665_v44 = vpack.c.bf16 %v113_v39, %v110_v38  ;;  %v112_v45 = vld [vmem:[#allocation9 + $0x108] sm:$0xff]  ;;  %v99_v46 = vld [vmem:[#allocation9 + $0xa0] sm:$0xff] }
  0x54   :  { %680 = vmatprep.subr.bf16.mxu1 %v907_v0  ;;  %v102_v47 = vld [vmem:[#allocation9 + $0xb8] sm:$0xff]  ;;  %v116_v48 = vld [vmem:[#allocation9 + $0x128] sm:$0xff]  ;;  %v119_v49 = vld [vmem:[#allocation9 + $0x140] sm:$0xff]  ;;  %v667_v50 = vpack.c.bf16 %v112_v45, %v109_v42 }
  0x55   :  { %v115_v51 = vld [vmem:[#allocation9 + $0x120] sm:$0xff]  ;;  %v687_v52 = vpack.c.bf16 %v102_v47, %v99_v46  ;;  %v669_v53 = vpack.c.bf16 %v119_v49, %v116_v48  ;;  %v118_v54 = vld [vmem:[#allocation9 + $0x138] sm:$0xff]  ;;  %v105_v55 = vld [vmem:[#allocation9 + $0xd0] sm:$0xff] }
  0x56   :  { %656 = vmatpush1.bf16.msra.mxu0 %v655_v21  ;;  %v108_v56 = vld [vmem:[#allocation9 + $0xe8] sm:$0xff]  ;;  %v122_v57 = vld [vmem:[#allocation9 + $0x158] sm:$0xff]  ;;  %v125_v58 = vld [vmem:[#allocation9 + $0x170] sm:$0xff]  ;;  %v671_v59 = vpack.c.bf16 %v118_v54, %v115_v51 }
  0x57   :  { %658 = vmatprep.subr.bf16.mxu0 %v657_v23  ;;  %682 = vmatpush3.bf16.msra.mxu1 %v681_v33  ;;  %v121_v60 = vld [vmem:[#allocation9 + $0x150] sm:$0xff]  ;;  %v690_v61 = vpack.c.bf16 %v108_v56, %v105_v55  ;;  %v673_v62 = vpack.c.bf16 %v125_v58, %v122_v57  ;;  %v124_v63 = vld [vmem:[#allocation9 + $0x168] sm:$0xff]  ;;  %v111_v2 = vld [vmem:[#allocation9 + $0x100] sm:$0xff] }
  0x58   :  { %683 = vmatprep.subr.bf16.mxu1 %v907_v0  ;;  %v114_v3 = vld [vmem:[#allocation9 + $0x118] sm:$0xff]  ;;  %v290_v4 = vld [vmem:[#allocation10 + $0x8] sm:$0xff]  ;;  %v293_v5 = vld [vmem:[#allocation10 + $0x20] sm:$0xff]  ;;  %v675_v6 = vpack.c.bf16 %v124_v63, %v121_v60 }
  0x59   :  { %v289_v7 = vld [vmem:[#allocation10] sm:$0xff]  ;;  %v693_v8 = vpack.c.bf16 %v114_v3, %v111_v2  ;;  %v701_v9 = vpack.c.bf16 %v293_v5, %v290_v4  ;;  %v292_v10 = vld [vmem:[#allocation10 + $0x18] sm:$0xff]  ;;  %v117_v11 = vld [vmem:[#allocation9 + $0x130] sm:$0xff] }
  0x5a   :  { %660 = vmatpush1.bf16.msra.mxu0 %v659_v32  ;;  %v120_v12 = vld [vmem:[#allocation9 + $0x148] sm:$0xff]  ;;  %v296_v13 = vld [vmem:[#allocation10 + $0x38] sm:$0xff]  ;;  %v299_v14 = vld [vmem:[#allocation10 + $0x50] sm:$0xff]  ;;  %v703_v16 = vpack.c.bf16 %v292_v10, %v289_v7 }
  0x5b   :  { %662 = vmatprep.subr.bf16.mxu0 %v661_v34  ;;  %685 = vmatpush3.bf16.msra.mxu1 %v684_v43  ;;  %v78_v15 = vld [vmem:[#allocation4] sm:$0xff]  ;;  %v696_v18 = vpack.c.bf16 %v120_v12, %v117_v11  ;;  %v705_v19 = vpack.c.bf16 %v299_v14, %v296_v13  ;;  %v298_v20 = vld [vmem:[#allocation10 + $0x48] sm:$0xff]  ;;  %v123_v21 = vld [vmem:[#allocation9 + $0x160] sm:$0xff] }
  0x5c   :  { %686 = vmatprep.subr.bf16.mxu1 %v907_v0  ;;  %v295_v17 = vld [vmem:[#allocation10 + $0x30] sm:$0xff]  ;;  %v126_v22 = vld [vmem:[#allocation9 + $0x178] sm:$0xff]  ;;  %v302_v23 = vld [vmem:[#allocation10 + $0x68] sm:$0xff] }
  0x5d   :  { %v305_v24 = vld [vmem:[#allocation10 + $0x80] sm:$0xff]  ;;  %v707_v25 = vpack.c.bf16 %v298_v20, %v295_v17  ;;  %v699_v27 = vpack.c.bf16 %v126_v22, %v123_v21  ;;  %v304_v29 = vld [vmem:[#allocation10 + $0x78] sm:$0xff]  ;;  %v291_v30 = vld [vmem:[#allocation10 + $0x10] sm:$0xff] }
  0x5e   :  { %664 = vmatpush1.bf16.msra.mxu0 %v663_v41  ;;  %v301_v26 = vld [vmem:[#allocation10 + $0x60] sm:$0xff]  ;;  %v709_v28 = vpack.c.bf16 %v305_v24, %v302_v23  ;;  %v294_v31 = vld [vmem:[#allocation10 + $0x28] sm:$0xff]  ;;  %v308_v32 = vld [vmem:[#allocation10 + $0x98] sm:$0xff] }
  0x5f   :  { %666 = vmatprep.subr.bf16.mxu0 %v665_v44  ;;  %688 = vmatpush3.bf16.msra.mxu1 %v687_v52  ;;  %v311_v33 = vld [vmem:[#allocation10 + $0xb0] sm:$0xff]  ;;  %v711_v34 = vpack.c.bf16 %v304_v29, %v301_v26  ;;  %v734_v36 = vpack.c.bf16 %v294_v31, %v291_v30  ;;  %v310_v38 = vld [vmem:[#allocation10 + $0xa8] sm:$0xff]  ;;  %v297_v39 = vld [vmem:[#allocation10 + $0x40] sm:$0xff] }
  0x60   :  { %689 = vmatprep.subr.bf16.mxu1 %v907_v0  ;;  %v307_v35 = vld [vmem:[#allocation10 + $0x90] sm:$0xff]  ;;  %v713_v37 = vpack.c.bf16 %v311_v33, %v308_v32  ;;  %v300_v40 = vld [vmem:[#allocation10 + $0x58] sm:$0xff]  ;;  %v314_v41 = vld [vmem:[#allocation10 + $0xc8] sm:$0xff] }
  0x61   :  { %v317_v42 = vld [vmem:[#allocation10 + $0xe0] sm:$0xff]  ;;  %v715_v43 = vpack.c.bf16 %v310_v38, %v307_v35  ;;  %v737_v45 = vpack.c.bf16 %v300_v40, %v297_v39  ;;  %v316_v47 = vld [vmem:[#allocation10 + $0xd8] sm:$0xff]  ;;  %v303_v48 = vld [vmem:[#allocation10 + $0x70] sm:$0xff] }
  0x62   :  { %668 = vmatpush1.bf16.msra.mxu0 %v667_v50  ;;  %v313_v44 = vld [vmem:[#allocation10 + $0xc0] sm:$0xff]  ;;  %v717_v46 = vpack.c.bf16 %v317_v42, %v314_v41  ;;  %v306_v49 = vld [vmem:[#allocation10 + $0x88] sm:$0xff]  ;;  %v320_v50 = vld [vmem:[#allocation10 + $0xf8] sm:$0xff] }
  0x63   :  { %670 = vmatprep.subr.bf16.mxu0 %v669_v53  ;;  %691 = vmatpush3.bf16.msra.mxu1 %v690_v61  ;;  %v323_v51 = vld [vmem:[#allocation10 + $0x110] sm:$0xff]  ;;  %v719_v52 = vpack.c.bf16 %v316_v47, %v313_v44  ;;  %v740_v54 = vpack.c.bf16 %v306_v49, %v303_v48  ;;  %v322_v56 = vld [vmem:[#allocation10 + $0x108] sm:$0xff]  ;;  %v309_v57 = vld [vmem:[#allocation10 + $0xa0] sm:$0xff] }
  0x64   :  { %692 = vmatprep.subr.bf16.mxu1 %v907_v0  ;;  %v319_v53 = vld [vmem:[#allocation10 + $0xf0] sm:$0xff]  ;;  %v721_v55 = vpack.c.bf16 %v323_v51, %v320_v50  ;;  %v312_v58 = vld [vmem:[#allocation10 + $0xb8] sm:$0xff]  ;;  %v329_v60 = vld [vmem:[#allocation10 + $0x140] sm:$0xff] }
  0x65   :  { %v723_v61 = vpack.c.bf16 %v322_v56, %v319_v53  ;;  %v743_v63 = vpack.c.bf16 %v312_v58, %v309_v57  ;;  %v328_v2 = vld [vmem:[#allocation10 + $0x138] sm:$0xff]  ;;  %v315_v3 = vld [vmem:[#allocation10 + $0xd0] sm:$0xff]  ;;  %v318_v4 = vld [vmem:[#allocation10 + $0xe8] sm:$0xff] }
  0x66   :  { %672 = vmatpush1.bf16.msra.mxu0 %v671_v59  ;;  %v326_v59 = vld [vmem:[#allocation10 + $0x128] sm:$0xff]  ;;  %v332_v5 = vld [vmem:[#allocation10 + $0x158] sm:$0xff]  ;;  %v321_v12 = vld [vmem:[#allocation10 + $0x100] sm:$0xff] }
  0x67   :  { %674 = vmatprep.subr.bf16.mxu0 %v673_v62  ;;  %694 = vmatpush3.bf16.msra.mxu1 %v693_v8  ;;  %v325_v62 = vld [vmem:[#allocation10 + $0x120] sm:$0xff]  ;;  %v331_v8 = vld [vmem:[#allocation10 + $0x150] sm:$0xff]  ;;  %v334_v11 = vld [vmem:[#allocation10 + $0x168] sm:$0xff] }
  0x68   :  { %695 = vmatprep.subr.bf16.mxu1 %v907_v0  ;;  %v727_v7 = vpack.c.bf16 %v328_v2, %v325_v62  ;;  %v324_v13 = vld [vmem:[#allocation10 + $0x118] sm:$0xff]  ;;  %v731_v14 = vpack.c.bf16 %v334_v11, %v331_v8  ;;  %v330_v17 = vld [vmem:[#allocation10 + $0x148] sm:$0xff]  ;;  %v333_v20 = vld [vmem:[#allocation10 + $0x160] sm:$0xff] }
  0x69   :  { %v336_v21 = vld [vmem:[#allocation10 + $0x178] sm:$0xff]  ;;  %v127_v29 = vld [vmem:[%s1033_s4] ss:$2 sm:$0x7] }
  0x6a   :  { %676 = vmatpush1.bf16.msra.mxu0 %v675_v6  ;;  %v335_v6 = vld [vmem:[#allocation10 + $0x170] sm:$0xff]  ;;  %v755_v22 = vpack.c.bf16 %v336_v21, %v333_v20 }
  0x6b   :  { %702 = vmatprep.subr.bf16.mxu0 %v701_v9  ;;  %697 = vmatpush3.bf16.msra.mxu1 %v696_v18  ;;  %v746_v9 = vpack.c.bf16 %v318_v4, %v315_v3  ;;  %v729_v10 = vpack.c.bf16 %v335_v6, %v332_v5  ;;  %v76_v18 = vld [vmem:[#allocation7] sm:$0xff] }
  0x6c   :  { %698 = vmatprep.subr.bf16.mxu1 %v907_v0 }
  0x6d   :  { %209 = vmatmul.mubr.f32.vlgmr.msra.gmra.mrb[0].mxu0 %v78_v15 }
  0x6e   :  { %704 = vmatpush1.bf16.msra.mxu0 %v703_v16  ;;  %419 = vmatprep.mubr.f32.mxu0 %v908_v1  ;;  %v327_v16 = vld [vmem:[#allocation10 + $0x130] sm:$0xff] }
  0x6f   :  { %706 = vmatprep.subr.bf16.mxu0 %v705_v19  ;;  %700 = vmatpush3.bf16.msra.mxu1 %v699_v27  ;;  %v752_v19 = vpack.c.bf16 %v330_v17, %v327_v16 }
  0x70   :  { %733 = vmatprep.subr.bf16.mxu1 %v907_v0 }
  0x72   :  { %708 = vmatpush1.bf16.msra.mxu0 %v707_v25  ;;  %608 = vmatmul.mubr.f32.vlgmr.msra.gmra.mrb[0].mxu1 %v78_v15  ;;  %v749_v15 = vpack.c.bf16 %v324_v13, %v321_v12  ;;  %v129_v25 = vlaneseq }
  0x73   :  { %710 = vmatprep.subr.bf16.mxu0 %v709_v28  ;;  %735 = vmatpush3.bf16.msra.mxu1 %v734_v36  ;;  %v538_v28 = vld [vmem:[%s1033_s4 + $0x1] ss:$2 sm:$0x7]  ;;  %s910_s4 = smov [#allocation12]  }
  0x74   :  { %736 = vmatprep.subr.bf16.mxu1 %v907_v0  ;;  %642 = vmatprep.mubr.msk.f32.mxu1 %vm909_vm0, %v908_v1  ;;  %v725_v1 = vpack.c.bf16 %v329_v60, %v326_v59  ;;  %v130_v26 = vshrl.u32 %v129_v25, 7  ;;  %s527_s17 = sshll.u32 %s910_s4, 4  ;;  %s528_s17 = int_to_ptr.vmem [resolvable:$true] %s527_s17 }
  0x75   :  { %s871_s18 = scalar_lea.vmem %s528_s17, 128  ;;  %p876_p5 = scmp.lt.s32.totalorder %s528_s17, %s528_s17 }
  0x76   :  { %712 = vmatpush1.bf16.msra.mxu0 %v711_v34  ;;  %v131_v27 = vsub.s32 0, %v130_v26  ;;  %v135_v33 = vsub.s32 1, %v130_v26  ;;  %p872_p4 = scmp.ne.s32.totalorder %s528_s17, %s871_s18  ;;  %p877_p6 = scmp.lt.s32.totalorder %s871_s18, %s871_s18 }
  0x77   :  { %714 = vmatprep.subr.bf16.mxu0 %v713_v37  ;;  %738 = vmatpush3.bf16.msra.mxu1 %v737_v45 }
  0x78   :  { %739 = vmatprep.subr.bf16.mxu1 %v907_v0  ;;  %v132_v30 = vrot.slane %v127_v29, %v131_v27  ;;  %v343_v31 = vrot.slane %v538_v28, %v131_v27  ;;  %v136_v35 = vrot.slane %v127_v29, %v135_v33  ;;  %v347_v36 = vrot.slane %v538_v28, %v135_v33  ;;  %p878_p7 = por %p877_p6, %p876_p5 }
  0x7a   :  { %716 = vmatpush1.bf16.msra.mxu0 %v715_v43  ;;  %v757_v32 = vadd.f32 %v343_v31, %v132_v30  ;;  %v759_v39 = vadd.f32 %v347_v36, %v136_v35  ;;  %p879_p8 = pnand %p878_p7, %p872_p4 }
  0x7b   :  { %718 = vmatprep.subr.bf16.mxu0 %v717_v46  ;;  %741 = vmatpush3.bf16.msra.mxu1 %v740_v54  ;;  %v139_v46 = vsub.s32 2, %v130_v26 }
  0x7c   :  { %742 = vmatprep.subr.bf16.mxu1 %v907_v0 }
  0x7d   :  { %v351_v47 = vrot.slane %v538_v28, %v139_v46  ;;  %v140_v48 = vrot.slane %v127_v29, %v139_v46 }
  0x7e   :  { %720 = vmatpush1.bf16.msra.mxu0 %v719_v52 }
  0x7f   :  { %722 = vmatprep.subr.bf16.mxu0 %v721_v55  ;;  %744 = vmatpush3.bf16.msra.mxu1 %v743_v63 }
  0x80   :  { %745 = vmatprep.subr.bf16.mxu1 %v907_v0 }
  0x82   :  { %724 = vmatpush1.bf16.msra.mxu0 %v723_v61 }
  0x83   :  { %726 = vmatprep.subr.bf16.mxu0 %v725_v1  ;;  %747 = vmatpush3.bf16.msra.mxu1 %v746_v9 }
  0x84   :  { %748 = vmatprep.subr.bf16.mxu1 %v907_v0 }
  0x86   :  { %728 = vmatpush1.bf16.msra.mxu0 %v727_v7 }
  0x87   :  { %730 = vmatprep.subr.bf16.mxu0 %v729_v10  ;;  %750 = vmatpush3.bf16.msra.mxu1 %v749_v15 }
  0x88   :  { %751 = vmatprep.subr.bf16.mxu1 %v907_v0 }
  0x8a   :  { %732 = vmatpush1.bf16.msra.mxu0 %v731_v14 }
  0x8b   :  { %753 = vmatpush3.bf16.msra.mxu1 %v752_v19 }
  0x8c   :  { %754 = vmatprep.subr.bf16.mxu1 %v907_v0 }
  0x8d   :  { %420 = vmatmul.mubr.f32.vlgmr.msra.gmra.mrb[0].mxu0 %v76_v18 }
  0x8f   :  { %756 = vmatpush3.bf16.msra.mxu1 %v755_v22 }
  0x92   :  { %643 = vmatmul.mubr.f32.vlgmr.msra.gmra.mrb[2].mxu1 %v76_v18 }
 0x145   :  { %v281_v23 = vpop.f32.mrb[0].mxu1 }
 0x146   :  { %v609_v24 = vpop.f32.mrb[1].mxu1  ;;  %v282_v52 = vadd.f32 %v281_v23, %v140_v48 }
 0x160   :  { %v421_v0 = vpop.f32.mrb[0].mxu0 }
 0x161   :  { %v758_v34 = vadd.f32 %v757_v32, %v421_v0  ;;  %v423_v37 = vpop.f32.mrb[1].mxu0 }
 0x162   :  { %v760_v41 = vadd.f32 %v759_v39, %v423_v37 }
 0x163   :  { %v539_v38 = vmul.f32 -1.442695, %v758_v34 }
 0x164   :  { %v540_v43 = vmul.f32 -1.442695, %v760_v41 }
 0x165   :  { %773 = vpow2.f32 %v539_v38  ;;  %v492_v40 = vpop.f32.mrb[2].mxu1 }
 0x166   :  { %v644_v42 = vpop.f32.mrb[3].mxu1  ;;  %775 = vpow2.f32 %v540_v43  ;;  %v493_v49 = vadd.f32 %v492_v40, %v351_v47 }
 0x16f   :  { %v774_v44 = vpop.eup %773 }
 0x170   :  { %v503_v45 = vadd.f32 1.0, %v774_v44  ;;  %v776_v50 = vpop.eup %775 }
 0x171   :  { %v510_v54 = vadd.f32 1.0, %v776_v50 }
 0x172   :  { %777 = vrcp.f32 %v503_v45 }
 0x17c   :  { %v778_v51 = vpop.eup %777 }
 0x17d   :  { %v513_v53 = vmul.f32 %v778_v51, %v493_v49 }
 0x17f   :  { %v514_v55 = vadd.f32 %v513_v53, %v282_v52 }
 0x181   :  { %779 = vtanh.f32 %v514_v55 }
 0x182   :  { %781 = vrcp.f32 %v510_v54 }
 0x18b   :  { %v780_v56 = vpop.eup %779 }
 0x18c   :  { %v516_v57 = vsub.f32 %v76_v18, %v780_v56  ;;  %v782_v58 = vpop.eup %781 }
 0x18e   :  { %v517_v59 = vmul.f32 %v782_v58, %v516_v57 }
 0x190   :  { %v518_v60 = vadd.f32 %v780_v56, %v517_v59 }
 0x192   :  { %519 = vst [vmem:[#allocation12] sm:$0xff] %v518_v60 }
 0x193   :  { %882 = shalt.err (!%p879_p8)
}
 0x194   :  { %s883_s22 = scalar_lea.hbm %s1034_s5, 128 }
 0x195   :  { %p884_p9 = scmp.ne.s32.totalorder %s1034_s5, %s883_s22  ;;  %p887_p10 = scmp.lt.u32.totalorder %s883_s22, %s1034_s5 }
 0x197   :  { %p889_p11 = pnand %p887_p10, %p884_p9 }
 0x199   :  { %892 = shalt.err (!%p889_p11)
}
 0x19a   :  { %530 = dma.vmem_to_hbm [thread:$0]  %s528_s17, 128, %s1034_s5, [#allocation6]  }
 0x19b   :  { %899 = dma.done.wait [#allocation6], 128  }
 0x19c   :  { %900 = vsyncadd [#allocation6], 4294967168 }
 0x19d   :  { %534 = vsyncpa [#allocation5], 1 }
 0x19e   :  { %535 = vsyncpa [#allocation8], 1 }
 0x19f   :  { %536 = vsyncpa [#allocation11], 1 }
 0x1a0   :  { %537 = vsyncpa [#allocation6], 1 }

</bundles_post_ra>
